<compile_context>
chip_gen: v6e
topology: v6e:2x2x1
jax: 0.10.0
libtpu: 0.0.40
codegen_flags: <defaults>
</compile_context>

<pallas_src>
import functools

import jax
import jax.numpy as jnp
from jax.experimental import pallas as pl
from jax.experimental.pallas import tpu as pltpu

gaussian_steps = {1: 1.596, 2: 0.996, 3: 0.586, 4: 0.336}

LANE = 128


# ----------------------------------------------------------------------------
# Weight quantization glue (tiny weight tensor, plain JAX inside the same jit)
# ----------------------------------------------------------------------------
def _gauss_quantize_rescaled_step(w, step, bit):
    lvls = 2.0 ** bit / 2.0
    y = (jnp.round(w / step + 0.5) - 0.5) * step
    thr = (lvls - 0.5) * step
    return jnp.clip(y, -thr, thr)


def _quant_per_channel(w, num_bits):
    # Forward is called with posonly=False, so only the symmetric branch runs.
    min_vals = jnp.min(w, axis=(0, 2, 3), keepdims=True)
    max_vals = jnp.max(w, axis=(0, 2, 3), keepdims=True)
    range_vals = 2.0 * jnp.maximum(jnp.abs(max_vals), jnp.abs(min_vals))
    max_int = 2.0 ** num_bits - 1.0
    # eps guard: an all-zero input channel would otherwise produce NaN/inf.
    scale = jnp.maximum(range_vals / max_int, 1e-12)
    lvls = max_int / 2.0
    y = (jnp.round(w / scale + 0.5) - 0.5) * scale
    thr = (lvls - 0.5) * scale
    return jnp.clip(y, -thr, thr)


def mix_quant_weight(weight, sw, bits):
    """weight: (O, C, KH, KW) in PyTorch OIHW layout."""
    std = jnp.std(weight, ddof=1)  # torch .std() is unbiased
    mix = jnp.zeros_like(weight)
    for i, bit in enumerate(bits):
        if bit < 8:
            step = gaussian_steps[bit] * std
            qw = _gauss_quantize_rescaled_step(weight, step, bit)
        elif bit < 32:
            qw = _quant_per_channel(weight, bit)
        else:
            qw = weight
        mix = mix + qw * sw[i]
    return mix


# ----------------------------------------------------------------------------
# Pallas conv2d kernel (stride=1, dilation=1, groups=1, bias=None)
# ----------------------------------------------------------------------------
def _round_up(x, m):
    return (x + m - 1) // m * m


def _choose_row_tile(Ho, Wo):
    """Largest divisor of Ho with TH*Wo <= 128 (bounds the MXU M dim / acc)."""
    best = 1
    for th in range(1, Ho + 1):
        if Ho % th == 0 and th * Wo <= 128:
            best = th
    return best


def _make_conv_kernel(KH, KW, TH):
    def kernel(x_ref, w_ref, o_ref, acc_ref):
        # x_ref  : (1, Hp, Wp, TC)  f32   padded image slab (resident per (n, c))
        # w_ref  : (KH, KW, TC, TO) bf16  weight tile (resident per (c, o))
        # o_ref  : (1, TH, Wo, TO)  f32   lane-dense output row tile
        # acc_ref: (TH*Wo, TO)      f32   VMEM accumulator across the C grid axis
        Wo = o_ref.shape[2]
        TC = x_ref.shape[3]
        c = pl.program_id(3)

        @pl.when(c == 0)
        def _():
            acc_ref[...] = jnp.zeros_like(acc_ref)

        row0 = pl.multiple_of(pl.program_id(2) * TH, TH)
        # Row band covering the halo for this output-row tile.
        band = x_ref[0, pl.ds(row0, TH + KH - 1), :, :]       # (TH+KH-1, Wp, TC)

        acc = acc_ref[...]
        for kh in range(KH):
            for kw in range(KW):
                patch = band[kh:kh + TH, kw:kw + Wo, :].reshape(TH * Wo, TC)
                acc = acc + jnp.dot(patch.astype(jnp.bfloat16),
                                    w_ref[kh, kw],
                                    preferred_element_type=jnp.float32)
        acc_ref[...] = acc

        @pl.when(c == pl.num_programs(3) - 1)
        def _():
            o_ref[...] = acc_ref[...].reshape(o_ref.shape).astype(o_ref.dtype)

    return kernel


def pallas_conv2d_nchw(x_nchw, w_oihw, stride=1, padding=1):
    # TODO(synk): only stride=1, dilation=1, groups=1 (the common 3x3 DARTS
    # conv configuration) is implemented in the Pallas kernel.
    assert stride == 1
    N, C, H, W = x_nchw.shape
    O, _, KH, KW = w_oihw.shape

    Hp, Wp = H + 2 * padding, W + 2 * padding
    Ho, Wo = Hp - KH + 1, Wp - KW + 1

    # ---- tiling -------------------------------------------------------------
    TH = _choose_row_tile(Ho, Wo)              # output-row tile
    O_pad = _round_up(O, LANE)                 # lane-dense output channels
    TO = 256 if O_pad % 256 == 0 else LANE     # 256-wide tiles when O allows
    if C <= 256:
        C_pad, TC = C, C                       # single contraction tile
    else:
        C_pad = _round_up(C, 256)
        TC = 256                               # C becomes a grid reduction axis

    # ---- layout plumbing (inside the enclosing jit so XLA fuses it) ----------
    xh = jnp.transpose(x_nchw, (0, 2, 3, 1))                        # NHWC
    xh = jnp.pad(xh, ((0, 0), (padding, padding), (padding, padding),
                      (0, C_pad - C)))
    wh = jnp.transpose(w_oihw, (2, 3, 1, 0))                        # HWIO
    wh = jnp.pad(wh, ((0, 0), (0, 0), (0, C_pad - C), (0, O_pad - O)))
    wh = wh.astype(jnp.bfloat16)                                    # bf16 MXU feed

    grid = (N, O_pad // TO, Ho // TH, C_pad // TC)

    flops = 2 * N * Ho * Wo * KH * KW * C_pad * O_pad
    bytes_accessed = xh.size * 4 + wh.size * 2 + N * Ho * Wo * O_pad * 4

    out = pl.pallas_call(
        _make_conv_kernel(KH, KW, TH),
        out_shape=jax.ShapeDtypeStruct((N, Ho, Wo, O_pad), jnp.float32),
        grid_spec=pltpu.PrefetchScalarGridSpec(
            num_scalar_prefetch=0,
            grid=grid,
            in_specs=[
                pl.BlockSpec((1, Hp, Wp, TC), lambda n, o, h, c: (n, 0, 0, c)),
                pl.BlockSpec((KH, KW, TC, TO), lambda n, o, h, c: (0, 0, c, o)),
            ],
            out_specs=pl.BlockSpec((1, TH, Wo, TO),
                                   lambda n, o, h, c: (n, h, 0, o)),
            scratch_shapes=[pltpu.VMEM((TH * Wo, TO), jnp.float32)],
        ),
        compiler_params=pltpu.CompilerParams(
            dimension_semantics=("parallel", "parallel", "parallel",
                                 "arbitrary")),
        cost_estimate=pl.CostEstimate(flops=flops, transcendentals=0,
                                      bytes_accessed=bytes_accessed),
    )(xh, wh)

    out = out[..., :O]                                              # drop O pad
    return jnp.transpose(out, (0, 3, 1, 2)).astype(x_nchw.dtype)    # back to NCHW


@functools.partial(jax.jit, static_argnames=("bits", "stride", "padding"))
def shared_mix_quant_conv2d(x, weight, sw, bits, stride=1, padding=1):
    mixw = mix_quant_weight(weight, sw, bits)
    return pallas_conv2d_nchw(x, mixw, stride=stride, padding=padding)


# ----------------------------------------------------------------------------
if __name__ == "__main__":
    key = jax.random.PRNGKey(0)
    k1, k2, k3 = jax.random.split(key, 3)

    # Small shapes consistent with the module's forward (NCHW input).
    N, C, H, W = 2, 8, 16, 16
    O, KH, KW = 16, 3, 3
    bits = (2, 4, 8, 32)           # exercises all three quantization branches

    x = jax.random.normal(k1, (N, C, H, W), jnp.float32)
    weight = jax.random.normal(k2, (O, C, KH, KW), jnp.float32) * 0.1
    sw = jax.nn.softmax(jax.random.normal(k3, (len(bits),), jnp.float32))

    out = shared_mix_quant_conv2d(x, weight, sw, bits=bits)
    out = jax.block_until_ready(out)
    assert out.shape == (N, O, H, W)

    # Reference: XLA conv on the bf16-rounded operands the kernel feeds the MXU
    # (products are then identical; only the f32 accumulation order differs).
    mixw = mix_quant_weight(weight, sw, bits)
    ref = jax.lax.conv_general_dilated(
        x.astype(jnp.bfloat16).astype(jnp.float32),
        mixw.astype(jnp.bfloat16).astype(jnp.float32),
        window_strides=(1, 1), padding=((1, 1), (1, 1)),
        dimension_numbers=("NCHW", "OIHW", "NCHW"),
        precision=jax.lax.Precision.HIGHEST)
    assert jnp.allclose(out, ref, atol=2e-3, rtol=2e-3), \
        float(jnp.max(jnp.abs(out - ref)))

    print("KERNEL_OK")
</pallas_src>

<mosaic_0001>
module attributes {stable_mosaic.version = 11 : i64} {
  func.func @kernel(%arg0: i32, %arg1: i32, %arg2: i32, %arg3: i32, %arg4: memref<1x18x18x8xf32, #tpu.memory_space<vmem>>, %arg5: memref<3x3x8x128xbf16, #tpu.memory_space<vmem>>, %arg6: memref<1x8x16x128xf32, #tpu.memory_space<vmem>>, %arg7: memref<128x128xf32, #tpu.memory_space<vmem>>) attributes {dimension_semantics = [#tpu.dimension_semantics<parallel>, #tpu.dimension_semantics<parallel>, #tpu.dimension_semantics<parallel>, #tpu.dimension_semantics<arbitrary>], iteration_bounds = array<i64: 2, 1, 2, 1>, scalar_prefetch = 0 : i64, scratch_operands = 1 : i64, tpu.core_type = #tpu.core_type<tc>, window_params = [{transform_indices = @transform_0, window_bounds = array<i64: 1, 18, 18, 8>}, {transform_indices = @transform_1, window_bounds = array<i64: 3, 3, 8, 128>}, {transform_indices = @transform_2, window_bounds = array<i64: 1, 8, 16, 128>}]} {
    %c0_i32 = arith.constant 0 : i32
    %0 = arith.cmpi eq, %arg3, %c0_i32 : i32
    %1 = arith.extui %0 : i1 to i32
    %c0_i32_0 = arith.constant 0 : i32
    %2 = arith.cmpi ne, %1, %c0_i32_0 : i32
    scf.if %2 {
      %cst_51 = arith.constant 0.000000e+00 : f32
      %76 = vector.broadcast %cst_51 : f32 to vector<128x128xf32>
      %c0_52 = arith.constant 0 : index
      %c0_53 = arith.constant 0 : index
      %77 = vector.load %arg7[%c0_52, %c0_53] : memref<128x128xf32, #tpu.memory_space<vmem>>, vector<128x128xf32>
      tpu.vector_store %arg7[%c0_52, %c0_53], %76 {strides = array<i32>} : memref<128x128xf32, #tpu.memory_space<vmem>>, vector<128x128xf32>,
    } else {
    }
    %c8_i32 = arith.constant 8 : i32
    %3 = arith.muli %arg2, %c8_i32 : i32
    %4 = tpu.assume_multiple %3, 8 : i32
    %c0 = arith.constant 0 : index
    %5 = arith.index_cast %4 : i32 to index
    %c0_1 = arith.constant 0 : index
    %c0_2 = arith.constant 0 : index
    %6 = vector.load %arg4[%c0, %5, %c0_1, %c0_2] : memref<1x18x18x8xf32, #tpu.memory_space<vmem>>, vector<1x10x18x8xf32>
    %7 = vector.shape_cast %6 : vector<1x10x18x8xf32> to vector<10x18x8xf32>
    %c0_3 = arith.constant 0 : index
    %c0_4 = arith.constant 0 : index
    %8 = vector.load %arg7[%c0_3, %c0_4] : memref<128x128xf32, #tpu.memory_space<vmem>>, vector<128x128xf32>
    %9 = vector.extract_strided_slice %7 {offsets = [0, 0, 0], sizes = [8, 16, 8], strides = [1, 1, 1]} : vector<10x18x8xf32> to vector<8x16x8xf32>
    %10 = vector.shape_cast %9 : vector<8x16x8xf32> to vector<128x8xf32>
    %11 = arith.truncf %10 : vector<128x8xf32> to vector<128x8xbf16>
    %c0_5 = arith.constant 0 : index
    %c0_6 = arith.constant 0 : index
    %c0_7 = arith.constant 0 : index
    %c0_8 = arith.constant 0 : index
    %12 = vector.load %arg5[%c0_5, %c0_6, %c0_7, %c0_8] : memref<3x3x8x128xbf16, #tpu.memory_space<vmem>>, vector<1x1x8x128xbf16>
    %13 = vector.shape_cast %12 : vector<1x1x8x128xbf16> to vector<8x128xbf16>
    %cst = arith.constant dense<0.000000e+00> : vector<128x128xf32>
    %14 = tpu.matmul %11, %13, %cst {dimension_numbers = #tpu.dot_dimension_numbers<[1], [0], [0], [1], [0, 0, 1, 1], [], []>} : vector<128x8xbf16>, vector<8x128xbf16>, vector<128x128xf32> -> vector<128x128xf32>
    %15 = arith.addf %8, %14 : vector<128x128xf32>
    %16 = vector.extract_strided_slice %7 {offsets = [0, 1, 0], sizes = [8, 16, 8], strides = [1, 1, 1]} : vector<10x18x8xf32> to vector<8x16x8xf32>
    %17 = vector.shape_cast %16 : vector<8x16x8xf32> to vector<128x8xf32>
    %18 = arith.truncf %17 : vector<128x8xf32> to vector<128x8xbf16>
    %c0_9 = arith.constant 0 : index
    %c1 = arith.constant 1 : index
    %c0_10 = arith.constant 0 : index
    %c0_11 = arith.constant 0 : index
    %19 = vector.load %arg5[%c0_9, %c1, %c0_10, %c0_11] : memref<3x3x8x128xbf16, #tpu.memory_space<vmem>>, vector<1x1x8x128xbf16>
    %20 = vector.shape_cast %19 : vector<1x1x8x128xbf16> to vector<8x128xbf16>
    %cst_12 = arith.constant dense<0.000000e+00> : vector<128x128xf32>
    %21 = tpu.matmul %18, %20, %cst_12 {dimension_numbers = #tpu.dot_dimension_numbers<[1], [0], [0], [1], [0, 0, 1, 1], [], []>} : vector<128x8xbf16>, vector<8x128xbf16>, vector<128x128xf32> -> vector<128x128xf32>
    %22 = arith.addf %15, %21 : vector<128x128xf32>
    %23 = vector.extract_strided_slice %7 {offsets = [0, 2, 0], sizes = [8, 16, 8], strides = [1, 1, 1]} : vector<10x18x8xf32> to vector<8x16x8xf32>
    %24 = vector.shape_cast %23 : vector<8x16x8xf32> to vector<128x8xf32>
    %25 = arith.truncf %24 : vector<128x8xf32> to vector<128x8xbf16>
    %c0_13 = arith.constant 0 : index
    %c2 = arith.constant 2 : index
    %c0_14 = arith.constant 0 : index
    %c0_15 = arith.constant 0 : index
    %26 = vector.load %arg5[%c0_13, %c2, %c0_14, %c0_15] : memref<3x3x8x128xbf16, #tpu.memory_space<vmem>>, vector<1x1x8x128xbf16>
    %27 = vector.shape_cast %26 : vector<1x1x8x128xbf16> to vector<8x128xbf16>
    %cst_16 = arith.constant dense<0.000000e+00> : vector<128x128xf32>
    %28 = tpu.matmul %25, %27, %cst_16 {dimension_numbers = #tpu.dot_dimension_numbers<[1], [0], [0], [1], [0, 0, 1, 1], [], []>} : vector<128x8xbf16>, vector<8x128xbf16>, vector<128x128xf32> -> vector<128x128xf32>
    %29 = arith.addf %22, %28 : vector<128x128xf32>
    %30 = vector.extract_strided_slice %7 {offsets = [1, 0, 0], sizes = [8, 16, 8], strides = [1, 1, 1]} : vector<10x18x8xf32> to vector<8x16x8xf32>
    %31 = vector.shape_cast %30 : vector<8x16x8xf32> to vector<128x8xf32>
    %32 = arith.truncf %31 : vector<128x8xf32> to vector<128x8xbf16>
    %c1_17 = arith.constant 1 : index
    %c0_18 = arith.constant 0 : index
    %c0_19 = arith.constant 0 : index
    %c0_20 = arith.constant 0 : index
    %33 = vector.load %arg5[%c1_17, %c0_18, %c0_19, %c0_20] : memref<3x3x8x128xbf16, #tpu.memory_space<vmem>>, vector<1x1x8x128xbf16>
    %34 = vector.shape_cast %33 : vector<1x1x8x128xbf16> to vector<8x128xbf16>
    %cst_21 = arith.constant dense<0.000000e+00> : vector<128x128xf32>
    %35 = tpu.matmul %32, %34, %cst_21 {dimension_numbers = #tpu.dot_dimension_numbers<[1], [0], [0], [1], [0, 0, 1, 1], [], []>} : vector<128x8xbf16>, vector<8x128xbf16>, vector<128x128xf32> -> vector<128x128xf32>
    %36 = arith.addf %29, %35 : vector<128x128xf32>
    %37 = vector.extract_strided_slice %7 {offsets = [1, 1, 0], sizes = [8, 16, 8], strides = [1, 1, 1]} : vector<10x18x8xf32> to vector<8x16x8xf32>
    %38 = vector.shape_cast %37 : vector<8x16x8xf32> to vector<128x8xf32>
    %39 = arith.truncf %38 : vector<128x8xf32> to vector<128x8xbf16>
    %c1_22 = arith.constant 1 : index
    %c1_23 = arith.constant 1 : index
    %c0_24 = arith.constant 0 : index
    %c0_25 = arith.constant 0 : index
    %40 = vector.load %arg5[%c1_22, %c1_23, %c0_24, %c0_25] : memref<3x3x8x128xbf16, #tpu.memory_space<vmem>>, vector<1x1x8x128xbf16>
    %41 = vector.shape_cast %40 : vector<1x1x8x128xbf16> to vector<8x128xbf16>
    %cst_26 = arith.constant dense<0.000000e+00> : vector<128x128xf32>
    %42 = tpu.matmul %39, %41, %cst_26 {dimension_numbers = #tpu.dot_dimension_numbers<[1], [0], [0], [1], [0, 0, 1, 1], [], []>} : vector<128x8xbf16>, vector<8x128xbf16>, vector<128x128xf32> -> vector<128x128xf32>
    %43 = arith.addf %36, %42 : vector<128x128xf32>
    %44 = vector.extract_strided_slice %7 {offsets = [1, 2, 0], sizes = [8, 16, 8], strides = [1, 1, 1]} : vector<10x18x8xf32> to vector<8x16x8xf32>
    %45 = vector.shape_cast %44 : vector<8x16x8xf32> to vector<128x8xf32>
    %46 = arith.truncf %45 : vector<128x8xf32> to vector<128x8xbf16>
    %c1_27 = arith.constant 1 : index
    %c2_28 = arith.constant 2 : index
    %c0_29 = arith.constant 0 : index
    %c0_30 = arith.constant 0 : index
    %47 = vector.load %arg5[%c1_27, %c2_28, %c0_29, %c0_30] : memref<3x3x8x128xbf16, #tpu.memory_space<vmem>>, vector<1x1x8x128xbf16>
    %48 = vector.shape_cast %47 : vector<1x1x8x128xbf16> to vector<8x128xbf16>
    %cst_31 = arith.constant dense<0.000000e+00> : vector<128x128xf32>
    %49 = tpu.matmul %46, %48, %cst_31 {dimension_numbers = #tpu.dot_dimension_numbers<[1], [0], [0], [1], [0, 0, 1, 1], [], []>} : vector<128x8xbf16>, vector<8x128xbf16>, vector<128x128xf32> -> vector<128x128xf32>
    %50 = arith.addf %43, %49 : vector<128x128xf32>
    %51 = vector.extract_strided_slice %7 {offsets = [2, 0, 0], sizes = [8, 16, 8], strides = [1, 1, 1]} : vector<10x18x8xf32> to vector<8x16x8xf32>
    %52 = vector.shape_cast %51 : vector<8x16x8xf32> to vector<128x8xf32>
    %53 = arith.truncf %52 : vector<128x8xf32> to vector<128x8xbf16>
    %c2_32 = arith.constant 2 : index
    %c0_33 = arith.constant 0 : index
    %c0_34 = arith.constant 0 : index
    %c0_35 = arith.constant 0 : index
    %54 = vector.load %arg5[%c2_32, %c0_33, %c0_34, %c0_35] : memref<3x3x8x128xbf16, #tpu.memory_space<vmem>>, vector<1x1x8x128xbf16>
    %55 = vector.shape_cast %54 : vector<1x1x8x128xbf16> to vector<8x128xbf16>
    %cst_36 = arith.constant dense<0.000000e+00> : vector<128x128xf32>
    %56 = tpu.matmul %53, %55, %cst_36 {dimension_numbers = #tpu.dot_dimension_numbers<[1], [0], [0], [1], [0, 0, 1, 1], [], []>} : vector<128x8xbf16>, vector<8x128xbf16>, vector<128x128xf32> -> vector<128x128xf32>
    %57 = arith.addf %50, %56 : vector<128x128xf32>
    %58 = vector.extract_strided_slice %7 {offsets = [2, 1, 0], sizes = [8, 16, 8], strides = [1, 1, 1]} : vector<10x18x8xf32> to vector<8x16x8xf32>
    %59 = vector.shape_cast %58 : vector<8x16x8xf32> to vector<128x8xf32>
    %60 = arith.truncf %59 : vector<128x8xf32> to vector<128x8xbf16>
    %c2_37 = arith.constant 2 : index
    %c1_38 = arith.constant 1 : index
    %c0_39 = arith.constant 0 : index
    %c0_40 = arith.constant 0 : index
    %61 = vector.load %arg5[%c2_37, %c1_38, %c0_39, %c0_40] : memref<3x3x8x128xbf16, #tpu.memory_space<vmem>>, vector<1x1x8x128xbf16>
    %62 = vector.shape_cast %61 : vector<1x1x8x128xbf16> to vector<8x128xbf16>
    %cst_41 = arith.constant dense<0.000000e+00> : vector<128x128xf32>
    %63 = tpu.matmul %60, %62, %cst_41 {dimension_numbers = #tpu.dot_dimension_numbers<[1], [0], [0], [1], [0, 0, 1, 1], [], []>} : vector<128x8xbf16>, vector<8x128xbf16>, vector<128x128xf32> -> vector<128x128xf32>
    %64 = arith.addf %57, %63 : vector<128x128xf32>
    %65 = vector.extract_strided_slice %7 {offsets = [2, 2, 0], sizes = [8, 16, 8], strides = [1, 1, 1]} : vector<10x18x8xf32> to vector<8x16x8xf32>
    %66 = vector.shape_cast %65 : vector<8x16x8xf32> to vector<128x8xf32>
    %67 = arith.truncf %66 : vector<128x8xf32> to vector<128x8xbf16>
    %c2_42 = arith.constant 2 : index
    %c2_43 = arith.constant 2 : index
    %c0_44 = arith.constant 0 : index
    %c0_45 = arith.constant 0 : index
    %68 = vector.load %arg5[%c2_42, %c2_43, %c0_44, %c0_45] : memref<3x3x8x128xbf16, #tpu.memory_space<vmem>>, vector<1x1x8x128xbf16>
    %69 = vector.shape_cast %68 : vector<1x1x8x128xbf16> to vector<8x128xbf16>
    %cst_46 = arith.constant dense<0.000000e+00> : vector<128x128xf32>
    %70 = tpu.matmul %67, %69, %cst_46 {dimension_numbers = #tpu.dot_dimension_numbers<[1], [0], [0], [1], [0, 0, 1, 1], [], []>} : vector<128x8xbf16>, vector<8x128xbf16>, vector<128x128xf32> -> vector<128x128xf32>
    %71 = arith.addf %64, %70 : vector<128x128xf32>
    %c0_47 = arith.constant 0 : index
    %c0_48 = arith.constant 0 : index
    %72 = vector.load %arg7[%c0_47, %c0_48] : memref<128x128xf32, #tpu.memory_space<vmem>>, vector<128x128xf32>
    tpu.vector_store %arg7[%c0_47, %c0_48], %71 {strides = array<i32>} : memref<128x128xf32, #tpu.memory_space<vmem>>, vector<128x128xf32>,
    %c0_i32_49 = arith.constant 0 : i32
    %73 = arith.cmpi eq, %arg3, %c0_i32_49 : i32
    %74 = arith.extui %73 : i1 to i32
    %c0_i32_50 = arith.constant 0 : i32
    %75 = arith.cmpi ne, %74, %c0_i32_50 : i32
    scf.if %75 {
      %c0_51 = arith.constant 0 : index
      %c0_52 = arith.constant 0 : index
      %76 = vector.load %arg7[%c0_51, %c0_52] : memref<128x128xf32, #tpu.memory_space<vmem>>, vector<128x128xf32>
      %77 = vector.shape_cast %76 : vector<128x128xf32> to vector<1x8x16x128xf32>
      %c0_53 = arith.constant 0 : index
      %c0_54 = arith.constant 0 : index
      %c0_55 = arith.constant 0 : index
      %c0_56 = arith.constant 0 : index
      %78 = vector.load %arg6[%c0_53, %c0_54, %c0_55, %c0_56] : memref<1x8x16x128xf32, #tpu.memory_space<vmem>>, vector<1x8x16x128xf32>
      tpu.vector_store %arg6[%c0_53, %c0_54, %c0_55, %c0_56], %77 {strides = array<i32>} : memref<1x8x16x128xf32, #tpu.memory_space<vmem>>, vector<1x8x16x128xf32>,
    } else {
    }
    return
  }
  func.func @transform_0(%arg0: i32, %arg1: i32, %arg2: i32, %arg3: i32) -> (i32, i32, i32, i32) {
    %c0_i32 = arith.constant 0 : i32
    %c0_i32_0 = arith.constant 0 : i32
    %c0_i32_1 = arith.constant 0 : i32
    return %arg0, %c0_i32, %c0_i32_0, %arg3 : i32, i32, i32, i32
  }
  func.func @transform_1(%arg0: i32, %arg1: i32, %arg2: i32, %arg3: i32) -> (i32, i32, i32, i32) {
    %c0_i32 = arith.constant 0 : i32
    %c0_i32_0 = arith.constant 0 : i32
    %c0_i32_1 = arith.constant 0 : i32
    return %c0_i32, %c0_i32_0, %arg3, %arg1 : i32, i32, i32, i32
  }
  func.func @transform_2(%arg0: i32, %arg1: i32, %arg2: i32, %arg3: i32) -> (i32, i32, i32, i32) {
    %c0_i32 = arith.constant 0 : i32
    %c0_i32_0 = arith.constant 0 : i32
    return %arg0, %arg2, %c0_i32, %arg1 : i32, i32, i32, i32
  }
}

</mosaic_0001>

<bundles_post_ra>
// kernel: shared_mix_quant_conv2d.1
= control target key start
LH: loop header
LB: loop body
LE: loop exit
PB: predicated region body
PF: predicated region fallthrough
CT: control target
= control target key end

     0   :  { %s2284_s9 = smov 0   ;;  %s2286_s10 = smov 0   ;;  %s3004_s0 = inlined_call_operand.vmem [shape: f32[2,18,18,8], index: 0, kind: input, shape index: {}]   ;;  %s3005_s1 = inlined_call_operand.vmem [shape: bf16[3,3,8,128], index: 1, kind: input, shape index: {}]   ;;  %s3006_s2 = inlined_call_operand.vmem [shape: f32[2,16,16,128], index: 2, kind: output, shape index: {}]  }
   0x1   :  { %s2288_s11 = smov 0   ;;  %s2290_s12 = smov 0  }
   0x2   :  { %s2292_s13 = smov 0  }
   0x3 LB: > { %s30_s14 = sadd.s32 1, %s2259_s11  ;;  %s38_s15 = sadd.s32 1, %s2263_s12  ;;  %s2267_s13 = sphi %s2292_s13, %s12_s13   ;;  %s2263_s12 = sphi %s2290_s12, %s3048_s12   ;;  %s2259_s11 = sphi %s2288_s11, %s3047_s11   ;;  %s2255_s10 = sphi %s2286_s10, %s3046_s10   ;;  %s2251_s9 = sphi %s2284_s9, %s3045_s9  }
   0x4   : > { %p32_p0 = scmp.ge.s32.totalorder %s30_s14, 2  ;;  %p1843_p1 = scmp.ge.s32.totalorder %s2267_s13, 1 }
   0x5   : > { %p161_p2 = scmp.lt.s32.totalorder %s2267_s13, 5 }
   0x6   : > { %s3050_s14 = smov (%p32_p0, %s30_s14), 0  ;;  %s3052_s15 = smov (!%p32_p0, %s38_s15), %s2263_s12 }
   0x7   : > { %p162_p3 = pnand %p1843_p1, %p161_p2  ;;  %p40_p4 = scmp.ge.s32.totalorder %s3052_s15, 2 }
   0x9   : > { %s3054_s15 = smov (%p40_p4, %s3052_s15), 0  ;;  %165 = sbr.rel (%p162_p3) target bundleno = 368 (0x170), region = 28 }
   0xe   : > { %v308_v0 = vld [vmem:[%s3005_s1] sm:$0xf]  ;;  %vm334_vm0 = vcmask 1043456   ;;  %p201_p5 = scmp.lt.s32.totalorder %s2255_s10, 1  ;;  %v1859_v2 = vld [vmem:[%s3005_s1 + $0x4] sm:$0xf] }
   0xf   : > { %2179 = vmatprep.subr.msk.bf16.mxu1 %vm334_vm0, %v308_v0  ;;  %2178 = vmatprep.subr.msk.bf16.mxu0 %vm334_vm0, %v308_v0  ;;  %v336_v1 = vsel %vm334_vm0, %v308_v0, 0  ;;  %v1868_v3 = vld [vmem:[%s3005_s1 + $0x8] sm:$0xf]  ;;  %s1850_s22 = smul.u32 192, %s2251_s9  ;;  %vm309_vm1 = vcmask 64512   ;;  %v567_v20 = vsel %vm334_vm0, %v1859_v2, 0 }
  0x10   : > { %2177 = vmatpush3.bf16.msra.mxu1 %v336_v1  ;;  %2015 = vmatpush3.bf16.msra.mxu0 %v336_v1  ;;  %s3056_s10 = smov (!%p201_p5, %s2255_s10), 1  ;;  %v774_v15 = vsel %vm334_vm0, %v1868_v3, 0  ;;  %v1886_v18 = vld [vmem:[%s3005_s1 + $0x10] sm:$0xf]  ;;  %v2399_v23 = vld [vmem:[%s3005_s1 + $0xc] sm:$0xf] }
  0x11   : > { %2180 = vmatprep.subr.msk.bf16.mxu1 %vm334_vm0, %v1859_v2  ;;  %2181 = vmatprep.subr.msk.bf16.mxu0 %vm334_vm0, %v1868_v3  ;;  %s2188_s23 = smul.u32 432, %s3056_s10  ;;  %vm475_vm2 = vcmask 1046528   ;;  %vm682_vm3 = vcmask 1045504   ;;  %v1028_v38 = vsel %vm334_vm0, %v1886_v18, 0  ;;  %s1845_s19 = sshll.u32 %s2251_s9, 3 }
  0x12   : > { %p219_p6 = scmp.lt.s32.totalorder %s1845_s19, 15  ;;  %s1847_s20 = sshll.u32 %s3056_s10, 5 }
  0x13   : > { %s208_s26 = scalar_lea.vmem %s3004_s0, %s2188_s23 }
  0x14   : > { %s2337_s27 = scalar_lea.vmem %s208_s26, %s1850_s22  ;;  %s3058_s19 = smov (!%p219_p6, %s1845_s19), 15 }
  0x15   : > { %v2340_v4 = vld [vmem:[%s2337_s27] sm:$0xff]  ;;  %v2343_v5 = vld [vmem:[%s2337_s27 + $0x8] sm:$0xff]  ;;  %v257_v9 = vld [vmem:[%s2337_s27 + $0x18] sm:$0xff]  ;;  %s1846_s9 = sshll.u32 %s3058_s19, 1 }
  0x16   : > { %v2346_v6 = vld [vmem:[%s2337_s27 + $0x60] sm:$0xff]  ;;  %v300_v7 = vpack.c.bf16 %v2343_v5, %v2340_v4  ;;  %v2351_v8 = vld [vmem:[%s2337_s27 + $0x68] sm:$0xff]  ;;  %v2362_v12 = vld [vmem:[%s2337_s27 + $0x78] sm:$0xff]  ;;  %v476_v24 = vrot.slane %v2340_v4, 1  ;;  %v477_v29 = vrot.slane %v2343_v5, 1  ;;  %v481_v30 = vrot.slane %v257_v9, 1  ;;  %s226_s21 = sadd.s32 %s1847_s20, %s1846_s9 }
  0x17   : > { %v2355_v10 = vld [vmem:[%s2337_s27 + $0x20] sm:$0xff]  ;;  %v2359_v11 = vpack.c.bf16 %v2351_v8, %v2346_v6  ;;  %v2375_v16 = vld [vmem:[%s2337_s27 + $0x30] sm:$0xff]  ;;  %v2378_v17 = vld [vmem:[%s2337_s27 + $0x38] sm:$0xff]  ;;  %v683_v35 = vrot.slane %v2340_v4, 2  ;;  %v684_v36 = vrot.slane %v2343_v5, 2  ;;  %v688_v39 = vrot.slane %v257_v9, 2 }
  0x18   : > { %2016 = vmatprep.mubr.msk.bf16.mxu0 %vm309_vm1, %v300_v7  ;;  %v2366_v13 = vpack.c.bf16 %v2355_v10, %v257_v9  ;;  %v2369_v14 = vld [vmem:[%s2337_s27 + $0x80] sm:$0xff]  ;;  %v2391_v21 = vld [vmem:[%s2337_s27 + $0x90] sm:$0xff]  ;;  %v2394_v22 = vld [vmem:[%s2337_s27 + $0x98] sm:$0xff]  ;;  %v2407_v26 = vpack.c.bf16 %v2378_v17, %v2375_v16  ;;  %v482_v31 = vrot.slane %v2355_v10, 1  ;;  %v689_v40 = vrot.slane %v2355_v10, 2  ;;  %s1848_s10 = sshll.u32 %s226_s21, 3 }
  0x19   : > { %2024 = vmatprep.mubr.msk.bf16.mxu1 %vm309_vm1, %v2359_v11  ;;  %v2387_v19 = vpack.c.bf16 %v2369_v14, %v2362_v12  ;;  %v259_v25 = vld [vmem:[%s2337_s27 + $0x28] sm:$0x3]  ;;  %v2413_v28 = vld [vmem:[%s2337_s27 + $0x50] sm:$0xff]  ;;  %v2420_v32 = vpack.c.bf16 %v2394_v22, %v2391_v21  ;;  %v703_v43 = vrot.slane %v2346_v6, 2  ;;  %v693_v44 = vrot.slane %v2375_v16, 2  ;;  %s2921_s24 = scalar_lea.vmem %s3006_s2, %s1848_s10 }
  0x1a   : > { %2017 = vmatmul.mubr.msk.bf16.vlgmr.msra.gmra.mxu0 %vm309_vm1, %v2366_v13  ;;  %v2410_v27 = vld [vmem:[%s2337_s27 + $0x48] sm:$0xff]  ;;  %v2426_v34 = vld [vmem:[%s2337_s27 + $0xb0] sm:$0xff]  ;;  %v691_v41 = vrot.slane %v259_v25, 2  ;;  %v694_v45 = vrot.slane %v2378_v17, 2  ;;  %v262_v47 = vld [vmem:[%s2337_s27 + $0x40] sm:$0x3]  ;;  %v483_v48 = vsel %vm475_vm2, %v481_v30, %v482_v31  ;;  %v478_v50 = vsel %vm475_vm2, %v476_v24, %v477_v29 }
  0x1b   : > { %2051 = vmatpush3.bf16.msra.mxu0 %v774_v15  ;;  %2025 = vmatmul.mubr.msk.bf16.vlgmr.msra.gmra.mxu1 %vm309_vm1, %v2387_v19  ;;  %v2423_v33 = vld [vmem:[%s2337_s27 + $0xa8] sm:$0xff]  ;;  %v256_v37 = vld [vmem:[%s2337_s27 + $0x10] sm:$0x3]  ;;  %v2441_v42 = vpack.c.bf16 %v2413_v28, %v2410_v27  ;;  %v484_v49 = vrot.slane %v259_v25, 1  ;;  %v486_v52 = vrot.slane %v2375_v16, 1  ;;  %v487_v53 = vrot.slane %v2378_v17, 1 }
  0x1c   : > { %2183 = vmatprep.subr.msk.bf16.mxu0 %vm334_vm0, %v1886_v18  ;;  %2033 = vmatpush3.bf16.msra.mxu1 %v567_v20  ;;  %v2448_v46 = vpack.c.bf16 %v2426_v34, %v2423_v33  ;;  %v479_v51 = vrot.slane %v256_v37, 1  ;;  %v685_v54 = vsel %vm682_vm3, %v683_v35, %v684_v36  ;;  %v686_v55 = vrot.slane %v256_v37, 2  ;;  %v265_v0 = vld [vmem:[%s2337_s27 + $0x58] sm:$0x3]  ;;  %v268_v5 = vld [vmem:[%s2337_s27 + $0x70] sm:$0x3] }
  0x1d   : > { %2020 = vmatprep.mubr.msk.bf16.mxu0 %vm309_vm1, %v2407_v26  ;;  %2182 = vmatprep.subr.msk.bf16.mxu1 %vm334_vm0, %v2399_v23  ;;  %v690_v56 = vsel %vm682_vm3, %v688_v39, %v689_v40  ;;  %v692_v57 = vsel %vm682_vm3, %v689_v40, %v691_v41  ;;  %v489_v59 = vrot.slane %v262_v47, 1  ;;  %v695_v62 = vsel %vm682_vm3, %v693_v44, %v694_v45 }
  0x1e   : > { %2028 = vmatprep.mubr.msk.bf16.mxu1 %vm309_vm1, %v2420_v32  ;;  %v480_v58 = vsel %vm475_vm2, %v477_v29, %v479_v51  ;;  %v687_v61 = vsel %vm682_vm3, %v684_v36, %v686_v55  ;;  %v696_v63 = vrot.slane %v262_v47, 2  ;;  %v485_v1 = vsel %vm475_vm2, %v482_v31, %v484_v49 }
  0x1f   : > { %v532_v60 = vpack.c.bf16 %v480_v58, %v478_v50  ;;  %v491_v2 = vrot.slane %v2410_v27, 1  ;;  %v492_v3 = vrot.slane %v2413_v28, 1  ;;  %v739_v4 = vpack.c.bf16 %v687_v61, %v685_v54  ;;  %v271_v50 = vld [vmem:[%s2337_s27 + $0x88] sm:$0x3] }
  0x20   : > { %v2471_v7 = vpack.c.bf16 %v692_v57, %v690_v56  ;;  %v488_v9 = vsel %vm475_vm2, %v486_v52, %v487_v53  ;;  %v490_v10 = vsel %vm475_vm2, %v487_v53, %v489_v59  ;;  %v697_v15 = vsel %vm682_vm3, %v694_v45, %v696_v63  ;;  %v2508_v45 = vld [vmem:[%s3005_s1 + $0x14] sm:$0xf]  ;;  %v2544_v61 = vld [vmem:[%s2337_s27 + $0xc8] sm:$0xff] }
  0x21   : > { %v698_v16 = vrot.slane %v2410_v27, 2  ;;  %v699_v17 = vrot.slane %v2413_v28, 2  ;;  %v2479_v18 = vpack.c.bf16 %v697_v15, %v695_v62  ;;  %v701_v20 = vrot.slane %v265_v0, 2  ;;  %v2492_v27 = vld [vmem:[%s3005_s1 + $0x18] sm:$0xf]  ;;  %v2559_v15 = vld [vmem:[%s2337_s27 + $0xe0] sm:$0xff] }
  0x22   : > { %2021 = vmatmul.mubr.msk.bf16.gmra.mxu0 %vm309_vm1, %v2441_v42  ;;  %v704_v24 = vrot.slane %v2351_v8, 2  ;;  %v2482_v25 = vpack.c.bf16 %v485_v1, %v483_v48  ;;  %v494_v29 = vrot.slane %v265_v0, 1  ;;  %v706_v30 = vrot.slane %v268_v5, 2 }
  0x23   : > { %2029 = vmatmul.mubr.msk.bf16.gmra.mxu1 %vm309_vm1, %v2448_v46  ;;  %2052 = vmatprep.mubr.msk.bf16.mxu0 %vm309_vm1, %v739_v4  ;;  %v496_v31 = vrot.slane %v2346_v6, 1  ;;  %v896_v35 = vsel %vm334_vm0, %v2399_v23, 0  ;;  %v2487_v36 = vpack.c.bf16 %v490_v10, %v488_v9  ;;  %v497_v28 = vrot.slane %v2351_v8, 1  ;;  %v274_v6 = vld [vmem:[%s2337_s27 + $0xa0] sm:$0x3]  ;;  %v2556_v10 = vld [vmem:[%s2337_s27 + $0xd8] sm:$0xff] }
  0x24   : > { %2034 = vmatprep.mubr.msk.bf16.mxu1 %vm309_vm1, %v532_v60  ;;  %v501_v37 = vrot.slane %v2362_v12, 1  ;;  %v502_v39 = vrot.slane %v2369_v14, 1  ;;  %v499_v40 = vrot.slane %v268_v5, 1  ;;  %v708_v23 = vrot.slane %v2362_v12, 2  ;;  %v2541_v60 = vld [vmem:[%s2337_s27 + $0xc0] sm:$0xff] }
  0x25   : > { %v493_v41 = vsel %vm475_vm2, %v491_v2, %v492_v3  ;;  %v700_v44 = vsel %vm682_vm3, %v698_v16, %v699_v17  ;;  %v702_v8 = vsel %vm682_vm3, %v699_v17, %v701_v20  ;;  %v709_v47 = vrot.slane %v2369_v14, 2  ;;  %v2549_v2 = vld [vmem:[%s2337_s27 + $0xd0] sm:$0x3]  ;;  %v283_v16 = vld [vmem:[%s2337_s27 + $0xe8] sm:$0x3] }
  0x26   : > { %v705_v48 = vsel %vm682_vm3, %v703_v43, %v704_v24  ;;  %v707_v49 = vsel %vm682_vm3, %v704_v24, %v706_v30  ;;  %v506_v51 = vrot.slane %v2391_v21, 1  ;;  %v507_v52 = vrot.slane %v2394_v22, 1 }
  0x27   : > { %v713_v53 = vrot.slane %v2391_v21, 2  ;;  %v714_v54 = vrot.slane %v2394_v22, 2  ;;  %v718_v43 = vrot.slane %v2423_v33, 2  ;;  %v2529_v55 = vpack.c.bf16 %v702_v8, %v700_v44 }
  0x28   : > { %v498_v56 = vsel %vm475_vm2, %v496_v31, %v497_v28  ;;  %v500_v57 = vsel %vm475_vm2, %v497_v28, %v499_v40  ;;  %v719_v21 = vrot.slane %v2426_v34, 2  ;;  %v2538_v58 = vpack.c.bf16 %v707_v49, %v705_v48 }
  0x29   : > { %v711_v59 = vrot.slane %v271_v50, 2  ;;  %v504_v62 = vrot.slane %v271_v50, 1  ;;  %v716_v63 = vrot.slane %v274_v6, 2  ;;  %v1143_v0 = vrot.slane %v2541_v60, 2 }
  0x2a   : > { %2053 = vmatmul.mubr.msk.bf16.vlgmr.msra.gmra.mxu0 %vm309_vm1, %v2471_v7  ;;  %v1144_v1 = vrot.slane %v2544_v61, 2  ;;  %v710_v4 = vsel %vm682_vm3, %v708_v23, %v709_v47  ;;  %v509_v5 = vrot.slane %v274_v6, 1  ;;  %v1146_v9 = vrot.slane %v2549_v2, 2  ;;  %v277_v23 = vld [vmem:[%s2337_s27 + $0xb8] sm:$0x3] }
  0x2b   : > { %2087 = vmatpush3.bf16.msra.mxu0 %v1028_v38  ;;  %2056 = vmatprep.mubr.msk.bf16.mxu0 %vm309_vm1, %v2479_v18  ;;  %v495_v38 = vsel %vm475_vm2, %v492_v3, %v494_v29  ;;  %v2551_v3 = vpack.c.bf16 %v500_v57, %v498_v56  ;;  %v715_v17 = vsel %vm682_vm3, %v713_v53, %v714_v54  ;;  %v1397_v24 = vrot.slane %v2556_v10, 1 }
  0x2c   : > { %2035 = vmatmul.mubr.msk.bf16.vlgmr.msra.gmra.mxu1 %vm309_vm1, %v2482_v25  ;;  %2185 = vmatprep.subr.msk.bf16.mxu0 %vm334_vm0, %v2492_v27  ;;  %v2536_v22 = vpack.c.bf16 %v495_v38, %v493_v41  ;;  %v1145_v20 = vsel %vm682_vm3, %v1143_v0, %v1144_v1  ;;  %v1398_v29 = vrot.slane %v2559_v15, 1  ;;  %v712_v30 = vsel %vm682_vm3, %v709_v47, %v711_v59 }
  0x2d   : > { %2069 = vmatpush3.bf16.msra.mxu1 %v896_v35  ;;  %2038 = vmatprep.mubr.msk.bf16.mxu1 %vm309_vm1, %v2487_v36  ;;  %v1147_v31 = vsel %vm682_vm3, %v1144_v1, %v1146_v9  ;;  %v1526_v35 = vrot.slane %v2556_v10, 2  ;;  %v1527_v28 = vrot.slane %v2559_v15, 2  ;;  %v717_v40 = vsel %vm682_vm3, %v714_v54, %v716_v63 }
  0x2e   : > { %2184 = vmatprep.subr.msk.bf16.mxu1 %vm334_vm0, %v2508_v45  ;;  %v2578_v41 = vpack.c.bf16 %v1147_v31, %v1145_v20  ;;  %v2581_v44 = vsel %vm475_vm2, %v1397_v24, %v1398_v29  ;;  %v1400_v8 = vrot.slane %v283_v16, 1  ;;  %v503_v47 = vsel %vm475_vm2, %v501_v37, %v502_v39 }
  0x2f   : > { %v505_v38 = vsel %vm475_vm2, %v502_v39, %v504_v62  ;;  %v2594_v48 = vsel %vm682_vm3, %v1526_v35, %v1527_v28  ;;  %v1529_v49 = vrot.slane %v283_v16, 2  ;;  %v2596_v50 = vpack.c.bf16 %v712_v30, %v710_v4 }
  0x30   : > { %v508_v53 = vsel %vm475_vm2, %v506_v51, %v507_v52  ;;  %v510_v54 = vsel %vm475_vm2, %v507_v52, %v509_v5  ;;  %v2601_v6 = vsel %vm475_vm2, %v1398_v29, %v1400_v8  ;;  %v2603_v12 = vpack.c.bf16 %v717_v40, %v715_v17 }
  0x31   : > { %v721_v37 = vrot.slane %v277_v23, 2  ;;  %v1404_v14 = vpack.c.bf16 %v2601_v6, %v2581_v44  ;;  %v2608_v39 = vsel %vm682_vm3, %v1527_v28, %v1529_v49  ;;  %v2610_v56 = vpack.c.bf16 %v505_v38, %v503_v47 }
  0x32   : > { %2057 = vmatmul.mubr.msk.bf16.gmra.mxu0 %vm309_vm1, %v2529_v55  ;;  %v1533_v57 = vpack.c.bf16 %v2608_v39, %v2594_v48  ;;  %v511_v51 = vrot.slane %v2423_v33, 1  ;;  %v512_v52 = vrot.slane %v2426_v34, 1  ;;  %v2616_v59 = vpack.c.bf16 %v510_v54, %v508_v53 }
  0x33   : > { %2060 = vmatprep.mubr.msk.bf16.mxu0 %vm309_vm1, %v2538_v58  ;;  %v514_v62 = vrot.slane %v277_v23, 1  ;;  %v720_v63 = vsel %vm682_vm3, %v718_v43, %v719_v21  ;;  %v722_v0 = vsel %vm682_vm3, %v719_v21, %v721_v37  ;;  %v1279_v43 = vsel %vm334_vm0, %v2492_v27, 0  ;;  %v1922_v21 = vld [vmem:[%s3005_s1 + $0x20] sm:$0xf] }
  0x34   : > { %2039 = vmatmul.mubr.msk.bf16.gmra.mxu1 %vm309_vm1, %v2536_v22  ;;  %v513_v33 = vsel %vm475_vm2, %v511_v51, %v512_v52  ;;  %v2630_v1 = vpack.c.bf16 %v722_v0, %v720_v63  ;;  %v1157_v5 = vsel %vm334_vm0, %v2508_v45, 0  ;;  %v1015_v27 = vrot.slane %v2544_v61, 1 }
  0x35   : > { %2042 = vmatprep.mubr.msk.bf16.mxu1 %vm309_vm1, %v2551_v3  ;;  %v515_v34 = vsel %vm475_vm2, %v512_v52, %v514_v62  ;;  %v1017_v45 = vrot.slane %v2549_v2, 1  ;;  %v889_v2 = vpack.c.bf16 %v2544_v61, %v2541_v60  ;;  %v1540_v20 = vsel %vm334_vm0, %v1922_v21, 0 }
  0x36   : > { %v2632_v4 = vpack.c.bf16 %v515_v34, %v513_v33 }
  0x37   : > { %v1018_v16 = vsel %vm475_vm2, %v1015_v27, %v1017_v45 }
  0x3a   : > { %2061 = vmatmul.mubr.msk.bf16.gmra.mxu0 %vm309_vm1, %v2596_v50 }
  0x3b   : > { %2064 = vmatprep.mubr.msk.bf16.mxu0 %vm309_vm1, %v2603_v12 }
  0x3c   : > { %2043 = vmatmul.mubr.msk.bf16.gmra.mxu1 %vm309_vm1, %v2610_v56 }
  0x3d   : > { %2046 = vmatprep.mubr.msk.bf16.mxu1 %vm309_vm1, %v2616_v59 }
  0x42   : > { %2065 = vmatmul.mubr.msk.bf16.gmra.mxu0 %vm309_vm1, %v2630_v1 }
  0x43   : > { %2088 = vmatprep.mubr.msk.bf16.mxu0 %vm309_vm1, %v2482_v25  ;;  %v1014_v25 = vrot.slane %v2541_v60, 1 }
  0x44   : > { %2047 = vmatmul.mubr.msk.bf16.gmra.mxu1 %vm309_vm1, %v2632_v4 }
  0x45   : > { %2070 = vmatprep.mubr.msk.bf16.mxu1 %vm309_vm1, %v2366_v13  ;;  %v1913_v13 = vld [vmem:[%s3005_s1 + $0x1c] sm:$0xf]  ;;  %v1016_v9 = vsel %vm475_vm2, %v1014_v25, %v1015_v27 }
  0x46   : > { %v1021_v17 = vpack.c.bf16 %v1018_v16, %v1016_v9  ;;  %v1411_v24 = vsel %vm334_vm0, %v1913_v13, 0 }
  0x4a   : > { %2089 = vmatmul.mubr.msk.bf16.vlgmr.msra.gmra.mxu0 %vm309_vm1, %v2487_v36 }
  0x4b   : > { %2123 = vmatpush3.bf16.msra.mxu0 %v1279_v43  ;;  %2092 = vmatprep.mubr.msk.bf16.mxu0 %vm309_vm1, %v2536_v22 }
  0x4c   : > { %2071 = vmatmul.mubr.msk.bf16.vlgmr.msra.gmra.mxu1 %vm309_vm1, %v2407_v26  ;;  %2187 = vmatprep.subr.msk.bf16.mxu0 %vm334_vm0, %v1922_v21 }
  0x4d   : > { %2105 = vmatpush3.bf16.msra.mxu1 %v1157_v5  ;;  %2074 = vmatprep.mubr.msk.bf16.mxu1 %vm309_vm1, %v2441_v42 }
  0x4e   : > { %2186 = vmatprep.subr.msk.bf16.mxu1 %vm334_vm0, %v1913_v13 }
  0x52   : > { %2093 = vmatmul.mubr.msk.bf16.gmra.mxu0 %vm309_vm1, %v2551_v3 }
  0x53   : > { %2096 = vmatprep.mubr.msk.bf16.mxu0 %vm309_vm1, %v2610_v56 }
  0x54   : > { %2075 = vmatmul.mubr.msk.bf16.gmra.mxu1 %vm309_vm1, %v2359_v11 }
  0x55   : > { %2078 = vmatprep.mubr.msk.bf16.mxu1 %vm309_vm1, %v2387_v19 }
  0x5a   : > { %2097 = vmatmul.mubr.msk.bf16.gmra.mxu0 %vm309_vm1, %v2616_v59 }
  0x5b   : > { %2100 = vmatprep.mubr.msk.bf16.mxu0 %vm309_vm1, %v2632_v4 }
  0x5c   : > { %2079 = vmatmul.mubr.msk.bf16.gmra.mxu1 %vm309_vm1, %v2420_v32 }
  0x5d   : > { %2082 = vmatprep.mubr.msk.bf16.mxu1 %vm309_vm1, %v2448_v46 }
  0x62   : > { %2101 = vmatmul.mubr.msk.bf16.gmra.mxu0 %vm309_vm1, %v1021_v17 }
  0x63   : > { %2124 = vmatprep.mubr.msk.bf16.mxu0 %vm309_vm1, %v2407_v26 }
  0x64   : > { %2083 = vmatmul.mubr.msk.bf16.gmra.mxu1 %vm309_vm1, %v889_v2 }
  0x65   : > { %2106 = vmatprep.mubr.msk.bf16.mxu1 %vm309_vm1, %v2471_v7 }
  0x6a   : > { %2125 = vmatmul.mubr.msk.bf16.vlgmr.msra.gmra.mxu0 %vm309_vm1, %v2441_v42 }
  0x6b   : > { %2159 = vmatpush3.bf16.msra.mxu0 %v1540_v20  ;;  %2128 = vmatprep.mubr.msk.bf16.mxu0 %vm309_vm1, %v2359_v11  ;;  %v1272_v11 = vpack.c.bf16 %v2559_v15, %v2556_v10 }
  0x6c   : > { %2107 = vmatmul.mubr.msk.bf16.vlgmr.msra.gmra.mxu1 %vm309_vm1, %v2479_v18 }
  0x6d   : > { %2141 = vmatpush3.bf16.msra.mxu1 %v1411_v24  ;;  %2110 = vmatprep.mubr.msk.bf16.mxu1 %vm309_vm1, %v2529_v55 }
  0x72   : > { %2129 = vmatmul.mubr.msk.bf16.gmra.mxu0 %vm309_vm1, %v2387_v19 }
  0x73   : > { %2132 = vmatprep.mubr.msk.bf16.mxu0 %vm309_vm1, %v2420_v32 }
  0x74   : > { %2111 = vmatmul.mubr.msk.bf16.gmra.mxu1 %vm309_vm1, %v2538_v58 }
  0x75   : > { %2114 = vmatprep.mubr.msk.bf16.mxu1 %vm309_vm1, %v2596_v50 }
  0x7a   : > { %2133 = vmatmul.mubr.msk.bf16.gmra.mxu0 %vm309_vm1, %v2448_v46 }
  0x7b   : > { %2136 = vmatprep.mubr.msk.bf16.mxu0 %vm309_vm1, %v889_v2 }
  0x7c   : > { %2115 = vmatmul.mubr.msk.bf16.gmra.mxu1 %vm309_vm1, %v2603_v12 }
  0x7d   : > { %2118 = vmatprep.mubr.msk.bf16.mxu1 %vm309_vm1, %v2630_v1 }
  0x82   : > { %2137 = vmatmul.mubr.msk.bf16.gmra.mxu0 %vm309_vm1, %v1272_v11 }
  0x83   : > { %2160 = vmatprep.mubr.msk.bf16.mxu0 %vm309_vm1, %v2479_v18 }
  0x84   : > { %2119 = vmatmul.mubr.msk.bf16.gmra.mxu1 %vm309_vm1, %v2578_v41 }
  0x85   : > { %2142 = vmatprep.mubr.msk.bf16.mxu1 %vm309_vm1, %v2487_v36 }
  0x8a   : > { %2161 = vmatmul.mubr.msk.bf16.vlgmr.msra.gmra.mxu0 %vm309_vm1, %v2529_v55 }
  0x8b   : > { %2164 = vmatprep.mubr.msk.bf16.mxu0 %vm309_vm1, %v2538_v58 }
  0x8c   : > { %2143 = vmatmul.mubr.msk.bf16.vlgmr.msra.gmra.mxu1 %vm309_vm1, %v2536_v22 }
  0x8d   : > { %2146 = vmatprep.mubr.msk.bf16.mxu1 %vm309_vm1, %v2551_v3 }
  0x92   : > { %2165 = vmatmul.mubr.msk.bf16.gmra.mxu0 %vm309_vm1, %v2596_v50 }
  0x93   : > { %2168 = vmatprep.mubr.msk.bf16.mxu0 %vm309_vm1, %v2603_v12 }
  0x94   : > { %2147 = vmatmul.mubr.msk.bf16.gmra.mxu1 %vm309_vm1, %v2610_v56 }
  0x95   : > { %2150 = vmatprep.mubr.msk.bf16.mxu1 %vm309_vm1, %v2616_v59 }
  0x9a   : > { %2169 = vmatmul.mubr.msk.bf16.gmra.mxu0 %vm309_vm1, %v2630_v1 }
  0x9b   : > { %2172 = vmatprep.mubr.msk.bf16.mxu0 %vm309_vm1, %v2578_v41 }
  0x9c   : > { %2151 = vmatmul.mubr.msk.bf16.gmra.mxu1 %vm309_vm1, %v2632_v4 }
  0x9d   : > { %2154 = vmatprep.mubr.msk.bf16.mxu1 %vm309_vm1, %v1021_v17 }
  0xa2   : > { %2173 = vmatmul.mubr.msk.bf16.gmra.mxu0 %vm309_vm1, %v1533_v57 }
  0xa4   : > { %2155 = vmatmul.mubr.msk.bf16.gmra.mxu1 %vm309_vm1, %v1404_v14 }
  0xda   : > { %v2018_v19 = vpop.f32.mrf.mxu0 }
  0xdb   : > { %v2026_v26 = vpop.f32.mrf.mxu1 }
  0xdc   : > { %v372_v32 = vpop.f32.mrf.mxu0 }
  0xdd   : > { %v404_v42 = vpop.f32.mrf.mxu1 }
  0xde   : > { %v2019_v46 = vpop.f32.mrf.mxu0 }
  0xdf   : > { %v2027_v7 = vpop.f32.mrf.mxu1 }
  0xe0   : > { %v375_v18 = vpop.f32.mrf.mxu0 }
  0xe1   : > { %v407_v36 = vpop.f32.mrf.mxu1 }
  0xe2   : > { %v2022_v55 = vpop.f32.mrf.mxu0 }
  0xe3   : > { %v2030_v22 = vpop.f32.mrf.mxu1 }
  0xe4   : > { %v388_v58 = vpop.f32.mrf.mxu0 }
  0xe5   : > { %v420_v60 = vpop.f32.mrf.mxu1 }
  0xe6   : > { %v2023_v61 = vpop.f32.mrf.mxu0 }
  0xe7   : > { %v2031_v3 = vpop.f32.mrf.mxu1 }
  0xe8   : > { %v391_v10 = vpop.f32.mrf.mxu0 }
  0xe9   : > { %v2756_v15 = vpop.f32.mrf.mxu1 }
  0xea   : > { %v2054_v29 = vpop.f32.mrf.mxu0 }
  0xec   : > { %v2036_v30 = vpop.f32.mrf.mxu1  ;;  %v810_v31 = vpop.f32.mrf.mxu0 }
  0xed   : > { %v668_v35 = vadd.f32 %v2036_v30, %v2018_v19 }
  0xee   : > { %v603_v28 = vpop.f32.mrf.mxu1  ;;  %v2055_v40 = vpop.f32.mrf.mxu0 }
  0xef   : > { %v2758_v23 = vadd.f32 %v2054_v29, %v668_v35  ;;  %v666_v41 = vadd.f32 %v603_v28, %v372_v32 }
  0xf0   : > { %v2037_v44 = vpop.f32.mrf.mxu1  ;;  %v813_v8 = vpop.f32.mrf.mxu0 }
  0xf1   : > { %v2760_v47 = vadd.f32 %v810_v31, %v666_v41  ;;  %v669_v38 = vadd.f32 %v2037_v44, %v2019_v46 }
  0xf2   : > { %v606_v48 = vpop.f32.mrf.mxu1  ;;  %v2058_v49 = vpop.f32.mrf.mxu0 }
  0xf3   : > { %v2762_v50 = vadd.f32 %v2055_v40, %v669_v38  ;;  %v667_v53 = vadd.f32 %v606_v48, %v375_v18 }
  0xf4   : > { %v2040_v54 = vpop.f32.mrf.mxu1  ;;  %v826_v6 = vpop.f32.mrf.mxu0 }
  0xf5   : > { %v2764_v12 = vadd.f32 %v813_v8, %v667_v53  ;;  %v672_v37 = vadd.f32 %v2040_v54, %v2022_v55 }
  0xf6   : > { %v619_v14 = vpop.f32.mrf.mxu1  ;;  %v2059_v39 = vpop.f32.mrf.mxu0 }
  0xf7   : > { %v2766_v56 = vadd.f32 %v2058_v49, %v672_v37  ;;  %v670_v57 = vadd.f32 %v619_v14, %v388_v58 }
  0xf8   : > { %v2041_v51 = vpop.f32.mrf.mxu1  ;;  %v829_v52 = vpop.f32.mrf.mxu0 }
  0xf9   : > { %v2768_v59 = vadd.f32 %v826_v6, %v670_v57  ;;  %v673_v62 = vadd.f32 %v2041_v51, %v2023_v61 }
  0xfa   : > { %v622_v63 = vpop.f32.mrf.mxu1  ;;  %v2062_v0 = vpop.f32.mrf.mxu0 }
  0xfb   : > { %v2770_v33 = vadd.f32 %v2059_v39, %v673_v62  ;;  %v671_v34 = vadd.f32 %v622_v63, %v391_v10 }
  0xfc   : > { %v2044_v1 = vpop.f32.mrf.mxu1  ;;  %v842_v4 = vpop.f32.mrf.mxu0 }
  0xfd   : > { %v2772_v43 = vadd.f32 %v829_v52, %v671_v34  ;;  %v676_v21 = vadd.f32 %v2044_v1, %v2026_v26 }
  0xfe   : > { %v635_v5 = vpop.f32.mrf.mxu1  ;;  %v2063_v13 = vpop.f32.mrf.mxu0 }
  0xff   : > { %v2774_v25 = vadd.f32 %v2062_v0, %v676_v21  ;;  %v674_v27 = vadd.f32 %v635_v5, %v404_v42 }
 0x100   : > { %v2045_v45 = vpop.f32.mrf.mxu1  ;;  %v845_v9 = vpop.f32.mrf.mxu0 }
 0x101   : > { %v2776_v16 = vadd.f32 %v842_v4, %v674_v27  ;;  %v677_v17 = vadd.f32 %v2045_v45, %v2027_v7 }
 0x102   : > { %v638_v2 = vpop.f32.mrf.mxu1  ;;  %v2066_v20 = vpop.f32.mrf.mxu0 }
 0x103   : > { %v2778_v24 = vadd.f32 %v2063_v13, %v677_v17  ;;  %v675_v11 = vadd.f32 %v638_v2, %v407_v36 }
 0x104   : > { %v2048_v19 = vpop.f32.mrf.mxu1  ;;  %v858_v32 = vpop.f32.mrf.mxu0 }
 0x105   : > { %v2780_v46 = vadd.f32 %v845_v9, %v675_v11  ;;  %v680_v26 = vadd.f32 %v2048_v19, %v2030_v22 }
 0x106   : > { %v651_v18 = vpop.f32.mrf.mxu1  ;;  %v2067_v55 = vpop.f32.mrf.mxu0 }
 0x107   : > { %v2782_v58 = vadd.f32 %v2066_v20, %v680_v26  ;;  %v678_v42 = vadd.f32 %v651_v18, %v420_v60 }
 0x108   : > { %v2049_v61 = vpop.f32.mrf.mxu1  ;;  %v861_v10 = vpop.f32.mrf.mxu0 }
 0x109   : > { %v2784_v29 = vadd.f32 %v858_v32, %v678_v42  ;;  %v681_v7 = vadd.f32 %v2049_v61, %v2031_v3 }
 0x10a   : > { %v654_v30 = vpop.f32.mrf.mxu1  ;;  %v2786_v31 = vpop.f32.mrf.mxu0 }
 0x10b   : > { %3007 = vst [vmem:[#allocation3_spill] sm:$0xff] %v2784_v29  ;;  %v2788_v35 = vadd.f32 %v2067_v55, %v681_v7  ;;  %v679_v36 = vadd.f32 %v654_v30, %v2756_v15 }
 0x10c   : > { %v2072_v28 = vpop.f32.mrf.mxu1  ;;  %v2791_v40 = vpop.f32.mrf.mxu0 }
 0x10d   : > { %3008 = vst [vmem:[#allocation4_spill] sm:$0xff] %v2788_v35  ;;  %v2793_v22 = vadd.f32 %v861_v10, %v679_v36 }
 0x10e   : > { %v932_v41 = vpop.f32.mrf.mxu1  ;;  %v2795_v44 = vpop.f32.mrf.mxu0 }
 0x10f   : > { %3009 = vst [vmem:[#allocation5_spill] sm:$0xff] %v2793_v22  ;;  %v995_v29 = vadd.f32 %v932_v41, %v2760_v47 }
 0x110   : > { %v2073_v60 = vpop.f32.mrf.mxu1  ;;  %v2797_v8 = vpop.f32.mrf.mxu0 }
 0x112   : > { %v2799_v38 = vpop.f32.mrf.mxu1  ;;  %v2801_v3 = vpop.f32.mrf.mxu0 }
 0x114   : > { %v2803_v48 = vpop.f32.mrf.mxu1  ;;  %v2805_v49 = vpop.f32.mrf.mxu0 }
 0x116   : > { %v2807_v15 = vpop.f32.mrf.mxu1  ;;  %v2809_v53 = vpop.f32.mrf.mxu0 }
 0x118   : > { %v2811_v54 = vpop.f32.mrf.mxu1  ;;  %v2813_v6 = vpop.f32.mrf.mxu0 }
 0x11a   : > { %v2815_v37 = vpop.f32.mrf.mxu1  ;;  %v2817_v14 = vpop.f32.mrf.mxu0 }
 0x11c   : > { %v2819_v39 = vpop.f32.mrf.mxu1  ;;  %v2821_v57 = vpop.f32.mrf.mxu0 }
 0x11e   : > { %v2823_v51 = vpop.f32.mrf.mxu1  ;;  %v2825_v52 = vpop.f32.mrf.mxu0 }
 0x120   : > { %v2827_v62 = vpop.f32.mrf.mxu1  ;;  %v2829_v63 = vpop.f32.mrf.mxu0 }
 0x121   : > { %3010 = vst [vmem:[#allocation6_spill] sm:$0xff] %v2829_v63 }
 0x122   : > { %v2831_v0 = vpop.f32.mrf.mxu1  ;;  %v2833_v34 = vpop.f32.mrf.mxu0 }
 0x123   : > { %3011 = vst [vmem:[#allocation7_spill] sm:$0xff] %v2833_v34  ;;  %v997_v34 = vadd.f32 %v2072_v28, %v2758_v23  ;;  %v1127_v28 = vadd.f32 %v2791_v40, %v995_v29 }
 0x124   : > { %v2835_v1 = vpop.f32.mrf.mxu1  ;;  %v2837_v4 = vpop.f32.mrf.mxu0 }
 0x125   : > { %3012 = vst [vmem:[#allocation8_spill] sm:$0xff] %v2837_v4 }
 0x126   : > { %v2839_v21 = vpop.f32.mrf.mxu1  ;;  %v2841_v5 = vpop.f32.mrf.mxu0 }
 0x127   : > { %3013 = vst [vmem:[#allocation9_spill] sm:$0xff] %v2839_v21  ;;  %3014 = vst [vmem:[#allocation10_spill] sm:$0xff] %v2841_v5 }
 0x128   : > { %v2843_v13 = vpop.f32.mrf.mxu1  ;;  %v2845_v27 = vpop.f32.mrf.mxu0 }
 0x129   : > { %3015 = vst [vmem:[#allocation11_spill] sm:$0xff] %v2843_v13  ;;  %3016 = vst [vmem:[#allocation12_spill] sm:$0xff] %v2845_v27 }
 0x12a   : > { %v2847_v45 = vpop.f32.mrf.mxu1  ;;  %v2126_v9 = vpop.f32.mrf.mxu0 }
 0x12b   : > { %3017 = vst [vmem:[#allocation13_spill] sm:$0xff] %v2847_v45 }
 0x12c   : > { %v2108_v17 = vpop.f32.mrf.mxu1  ;;  %v1315_v2 = vpop.f32.mrf.mxu0 }
 0x12e   : > { %v1193_v20 = vpop.f32.mrf.mxu1  ;;  %v2127_v11 = vpop.f32.mrf.mxu0 }
 0x130   : > { %v2109_v19 = vpop.f32.mrf.mxu1  ;;  %v2849_v32 = vpop.f32.mrf.mxu0 }
 0x132   : > { %v1196_v26 = vpop.f32.mrf.mxu1  ;;  %v2851_v18 = vpop.f32.mrf.mxu0 }
 0x134   : > { %v2112_v55 = vpop.f32.mrf.mxu1  ;;  %v2853_v42 = vpop.f32.mrf.mxu0 }
 0x136   : > { %v2855_v61 = vpop.f32.mrf.mxu1  ;;  %v2857_v10 = vpop.f32.mrf.mxu0 }
 0x138   : > { %v2859_v7 = vpop.f32.mrf.mxu1  ;;  %v2861_v30 = vpop.f32.mrf.mxu0 }
 0x13a   : > { %v2863_v36 = vpop.f32.mrf.mxu1  ;;  %v2865_v27 = vpop.f32.mrf.mxu0 }
 0x13b   : > { %3018 = vst [vmem:[#allocation14_spill] sm:$0xff] %v2865_v27 }
 0x13c   : > { %v2868_v5 = vpop.f32.mrf.mxu1  ;;  %v2870_v45 = vpop.f32.mrf.mxu0 }
 0x13d   : > { %3019 = vst [vmem:[#allocation15_spill] sm:$0xff] %v2870_v45 }
 0x13e   : > { %v2872_v22 = vpop.f32.mrf.mxu1  ;;  %v2874_v4 = vpop.f32.mrf.mxu0 }
 0x13f   : > { %3020 = vst [vmem:[#allocation16_spill] sm:$0xff] %v2872_v22  ;;  %3021 = vst [vmem:[#allocation17_spill] sm:$0xff] %v2874_v4  ;;  %v1129_v22 = vadd.f32 %v2786_v31, %v997_v34  ;;  %v998_v4 = vadd.f32 %v2073_v60, %v2762_v50  ;;  %v1001_v50 = vadd.f32 %v2803_v48, %v2766_v56 }
 0x140   : > { %v2876_v13 = vpop.f32.mrf.mxu1  ;;  %v2878_v35 = vpop.f32.mrf.mxu0  ;;  %v1256_v60 = vadd.f32 %v1193_v20, %v1127_v28  ;;  %v999_v34 = vadd.f32 %v2807_v15, %v2768_v59  ;;  %v1000_v15 = vadd.f32 %v2815_v37, %v2772_v43 }
 0x141   : > { %3022 = vst [vmem:[#allocation18_spill] sm:$0xff] %v2878_v35  ;;  %v1258_v47 = vadd.f32 %v2108_v17, %v1129_v22  ;;  %v1130_v31 = vadd.f32 %v2795_v44, %v998_v4  ;;  %v1133_v4 = vadd.f32 %v2801_v3, %v1001_v50 }
 0x142   : > { %v2881_v21 = vpop.f32.mrf.mxu1  ;;  %v2883_v27 = vpop.f32.mrf.mxu0  ;;  %v1378_v56 = vadd.f32 %v1315_v2, %v1256_v60  ;;  %v1131_v59 = vadd.f32 %v2805_v49, %v999_v34  ;;  %v1005_v49 = vadd.f32 %v2819_v39, %v2774_v25  ;;  %v1006_v60 = vadd.f32 %v2827_v62, %v2778_v24 }
 0x143   : > { %3023 = vst [vmem:[#allocation19_spill] sm:$0xff] %v2883_v27  ;;  %v996_v27 = vadd.f32 %v2799_v38, %v2764_v12  ;;  %v1380_v40 = vadd.f32 %v2126_v9, %v1258_v47  ;;  %v1259_v22 = vadd.f32 %v2109_v19, %v1130_v31  ;;  %v1002_v38 = vadd.f32 %v2811_v54, %v2770_v33 }
 0x144   : > { %v2886_v45 = vpop.f32.mrf.mxu1  ;;  %v2888_v63 = vpop.f32.mrf.mxu0 }
 0x145   : > { %3024 = vst [vmem:[#allocation20_spill] sm:$0xff] %v2886_v45  ;;  %v1128_v12 = vadd.f32 %v2797_v8, %v996_v27  ;;  %v1381_v54 = vadd.f32 %v2127_v11, %v1259_v22  ;;  %v1262_v27 = vadd.f32 %v2112_v55, %v1133_v4  ;;  %v1134_v2 = vadd.f32 %v2809_v53, %v1002_v38 }
 0x146   : > { %v2893_v35 = vpop.f32.mrf.mxu1  ;;  %v2895_v23 = vpop.f32.mrf.mxu0  ;;  %v1132_v11 = vadd.f32 %v2813_v6, %v1000_v15  ;;  %v1003_v55 = vadd.f32 %v2823_v51, %v2776_v16  ;;  %v1009_v38 = vadd.f32 %v2835_v1, %v2782_v58 }
 0x147   : > { %3025 = vst [vmem:[#allocation21_spill] sm:$0xff] %v2895_v23  ;;  %v1257_v48 = vadd.f32 %v1196_v26, %v1128_v12  ;;  %v1260_v26 = vadd.f32 %v2855_v61, %v1131_v59  ;;  %v1384_v50 = vadd.f32 %v2851_v18, %v1262_v27  ;;  %v1263_v25 = vadd.f32 %v2859_v7, %v1134_v2 }
 0x148   : > { %v2900_v41 = vpop.f32.mrf.mxu1  ;;  %v2902_v45 = vpop.f32.mrf.mxu0  ;;  %v1137_v61 = vadd.f32 %v2817_v14, %v1005_v49  ;;  %v1261_v16 = vadd.f32 %v2863_v36, %v1132_v11  ;;  %v1135_v7 = vadd.f32 %v2821_v57, %v1003_v55  ;;  %v1004_v12 = vadd.f32 %v2831_v0, %v2780_v46  ;;  %v3026_v46 = vld [vmem:[#allocation16_spill] sm:$0xff]  ;;  %v3036_v55 = vld [vmem:[#allocation5_spill] sm:$0xff] }
 0x149   : > { %v1379_v37 = vadd.f32 %v2849_v32, %v1257_v48  ;;  %v1385_v22 = vadd.f32 %v2857_v10, %v1263_v25  ;;  %v1138_v36 = vadd.f32 %v2825_v52, %v1006_v60  ;;  %v3028_v48 = vld [vmem:[#allocation3_spill] sm:$0xff] }
 0x14a   : > { %v2909_v23 = vpop.f32.mrf.mxu1  ;;  %v2162_v29 = vpop.f32.mrf.mxu0  ;;  %v1266_v24 = vadd.f32 %v2868_v5, %v1137_v61  ;;  %v1264_v0 = vadd.f32 %v3026_v46, %v1135_v7 }
 0x14b   : > { %v1267_v58 = vadd.f32 %v2876_v13, %v1138_v36  ;;  %v3035_v13 = vld [vmem:[#allocation8_spill] sm:$0xff]  ;;  %v3043_v36 = vld [vmem:[#allocation19_spill] sm:$0xff] }
 0x14c   : > { %v2144_v17 = vpop.f32.mrf.mxu1  ;;  %v1576_v44 = vpop.f32.mrf.mxu0  ;;  %v3039_v61 = vld [vmem:[#allocation20_spill] sm:$0xff] }
 0x14d   : > { %v1512_v20 = vadd.f32 %v2144_v17, %v1380_v40 }
 0x14e   : > { %v1447_v8 = vpop.f32.mrf.mxu1  ;;  %v2163_v33 = vpop.f32.mrf.mxu0 }
 0x14f   : > { %v1641_v9 = vadd.f32 %v2162_v29, %v1512_v20  ;;  %v1510_v3 = vadd.f32 %v1447_v8, %v1378_v56  ;;  %v1382_v29 = vadd.f32 %v2853_v42, %v1260_v26  ;;  %v3027_v56 = vld [vmem:[#allocation6_spill] sm:$0xff]  ;;  %v3029_v20 = vld [vmem:[#allocation9_spill] sm:$0xff] }
 0x150   : > { %v2145_v19 = vpop.f32.mrf.mxu1  ;;  %v1579_v43 = vpop.f32.mrf.mxu0  ;;  %v1136_v5 = vadd.f32 %v3027_v56, %v1004_v12  ;;  %v1007_v59 = vadd.f32 %v3029_v20, %v3028_v48  ;;  %v3030_v8 = vld [vmem:[#allocation14_spill] sm:$0xff]  ;;  %v3044_v48 = vld [vmem:[#allocation21_spill] sm:$0xff] }
 0x151   : > { %1692 = vst [vmem:[%s2921_s24 + $0x10] sm:$0xff] %v1641_v9  ;;  %v1639_v28 = vadd.f32 %v1576_v44, %v1510_v3  ;;  %v1513_v47 = vadd.f32 %v2145_v19, %v1381_v54  ;;  %v1383_v44 = vadd.f32 %v2861_v30, %v1261_v16  ;;  %v3031_v54 = vld [vmem:[#allocation7_spill] sm:$0xff]  ;;  %v3032_v9 = vld [vmem:[#allocation4_spill] sm:$0xff] }
 0x152   : > { %v1450_v31 = vpop.f32.mrf.mxu1  ;;  %v2166_v53 = vpop.f32.mrf.mxu0  ;;  %v1141_v27 = vadd.f32 %v3031_v54, %v1009_v38  ;;  %v3033_v3 = vld [vmem:[#allocation11_spill] sm:$0xff]  ;;  %v1265_v26 = vadd.f32 %v2881_v21, %v1136_v5  ;;  %v1139_v11 = vadd.f32 %v3035_v13, %v1007_v59  ;;  %v3040_v21 = vld [vmem:[#allocation10_spill] sm:$0xff] }
 0x153   : > { %1690 = vst [vmem:[%s2921_s24] sm:$0xff] %v1639_v28  ;;  %v1642_v39 = vadd.f32 %v2163_v33, %v1513_v47  ;;  %v1511_v32 = vadd.f32 %v1450_v31, %v1379_v37  ;;  %v1388_v33 = vadd.f32 %v3030_v8, %v1266_v24  ;;  %v1010_v2 = vadd.f32 %v3033_v3, %v3032_v9  ;;  %v3037_v31 = vld [vmem:[#allocation13_spill] sm:$0xff] }
 0x154   : > { %v2148_v34 = vpop.f32.mrf.mxu1  ;;  %v1592_v6 = vpop.f32.mrf.mxu0  ;;  %v1270_v60 = vadd.f32 %v3039_v61, %v1141_v27  ;;  %v1268_v12 = vadd.f32 %v2893_v35, %v1139_v11 }
 0x155   : > { %1693 = vst [vmem:[%s2921_s24 + $0x18] sm:$0xff] %v1642_v39  ;;  %v1640_v51 = vadd.f32 %v1579_v43, %v1511_v32  ;;  %v1516_v18 = vadd.f32 %v2148_v34, %v1384_v50  ;;  %v3034_v43 = vld [vmem:[#allocation15_spill] sm:$0xff]  ;;  %v3038_v39 = vld [vmem:[#allocation17_spill] sm:$0xff] }
 0x156   : > { %v1463_v40 = vpop.f32.mrf.mxu1  ;;  %v2167_v14 = vpop.f32.mrf.mxu0  ;;  %v1386_v37 = vadd.f32 %v3034_v43, %v1264_v0  ;;  %v1389_v32 = vadd.f32 %v3038_v39, %v1267_v58  ;;  %v1392_v38 = vadd.f32 %v3043_v36, %v1270_v60  ;;  %v1390_v35 = vadd.f32 %v2888_v63, %v1268_v12 }
 0x157   : > { %1691 = vst [vmem:[%s2921_s24 + $0x8] sm:$0xff] %v1640_v51  ;;  %v1645_v62 = vadd.f32 %v2166_v53, %v1516_v18  ;;  %v1514_v42 = vadd.f32 %v1463_v40, %v1382_v29  ;;  %v1008_v53 = vadd.f32 %v3037_v31, %v3036_v55  ;;  %v1142_v29 = vadd.f32 %v3040_v21, %v1010_v2  ;;  %v3041_v18 = vld [vmem:[#allocation18_spill] sm:$0xff] }
 0x158   : > { %v2149_v17 = vpop.f32.mrf.mxu1  ;;  %v1595_v57 = vpop.f32.mrf.mxu0  ;;  %v1387_v7 = vadd.f32 %v3041_v18, %v1265_v26 }
 0x159   : > { %1696 = vst [vmem:[%s2921_s24 + $0x30] sm:$0xff] %v1645_v62  ;;  %v1643_v4 = vadd.f32 %v1592_v6, %v1514_v42  ;;  %v1517_v10 = vadd.f32 %v2149_v17, %v1385_v22  ;;  %v3042_v22 = vld [vmem:[#allocation12_spill] sm:$0xff]  ;;  %v1271_v17 = vadd.f32 %v2900_v41, %v1142_v29 }
 0x15a   : > { %v1466_v15 = vpop.f32.mrf.mxu1  ;;  %v2170_v52 = vpop.f32.mrf.mxu0  ;;  %v1140_v24 = vadd.f32 %v3042_v22, %v1008_v53 }
 0x15b   : > { %1694 = vst [vmem:[%s2921_s24 + $0x20] sm:$0xff] %v1643_v4  ;;  %v1646_v1 = vadd.f32 %v2167_v14, %v1517_v10  ;;  %v1515_v30 = vadd.f32 %v1466_v15, %v1383_v44  ;;  %v1393_v20 = vadd.f32 %v3044_v48, %v1271_v17 }
 0x15c   : > { %v2152_v49 = vpop.f32.mrf.mxu1  ;;  %v1608_v19 = vpop.f32.mrf.mxu0  ;;  %v1269_v4 = vadd.f32 %v2909_v23, %v1140_v24 }
 0x15d   : > { %1697 = vst [vmem:[%s2921_s24 + $0x38] sm:$0xff] %v1646_v1  ;;  %v1644_v28 = vadd.f32 %v1595_v57, %v1515_v30  ;;  %v1520_v47 = vadd.f32 %v2152_v49, %v1388_v33 }
 0x15e   : > { %v1479_v50 = vpop.f32.mrf.mxu1  ;;  %v2171_v25 = vpop.f32.mrf.mxu0  ;;  %v1391_v8 = vadd.f32 %v2902_v45, %v1269_v4 }
 0x15f   : > { %1695 = vst [vmem:[%s2921_s24 + $0x28] sm:$0xff] %v1644_v28  ;;  %v1649_v34 = vadd.f32 %v2170_v52, %v1520_v47  ;;  %v1518_v6 = vadd.f32 %v1479_v50, %v1386_v37 }
 0x160   : > { %v2153_v16 = vpop.f32.mrf.mxu1  ;;  %v1611_v51 = vpop.f32.mrf.mxu0 }
 0x161   : > { %1700 = vst [vmem:[%s2921_s24 + $0x50] sm:$0xff] %v1649_v34  ;;  %v1647_v40 = vadd.f32 %v1608_v19, %v1518_v6  ;;  %v1521_v14 = vadd.f32 %v2153_v16, %v1389_v32 }
 0x162   : > { %v1482_v62 = vpop.f32.mrf.mxu1  ;;  %v2174_v42 = vpop.f32.mrf.mxu0 }
 0x163   : > { %1698 = vst [vmem:[%s2921_s24 + $0x40] sm:$0xff] %v1647_v40  ;;  %v1650_v57 = vadd.f32 %v2171_v25, %v1521_v14  ;;  %v1519_v44 = vadd.f32 %v1482_v62, %v1387_v7 }
 0x164   : > { %v2156_v46 = vpop.f32.mrf.mxu1  ;;  %v1624_v0 = vpop.f32.mrf.mxu0 }
 0x165   : > { %1701 = vst [vmem:[%s2921_s24 + $0x58] sm:$0xff] %v1650_v57  ;;  %v1648_v10 = vadd.f32 %v1611_v51, %v1519_v44  ;;  %v1524_v56 = vadd.f32 %v2156_v46, %v1392_v38 }
 0x166   : > { %v1495_v5 = vpop.f32.mrf.mxu1  ;;  %v2175_v52 = vpop.f32.mrf.mxu0 }
 0x167   : > { %1699 = vst [vmem:[%s2921_s24 + $0x48] sm:$0xff] %v1648_v10  ;;  %v1653_v41 = vadd.f32 %v2174_v42, %v1524_v56  ;;  %v1522_v59 = vadd.f32 %v1495_v5, %v1390_v35 }
 0x168   : > { %v2157_v15 = vpop.f32.mrf.mxu1  ;;  %v1627_v30 = vpop.f32.mrf.mxu0 }
 0x169   : > { %1704 = vst [vmem:[%s2921_s24 + $0x70] sm:$0xff] %v1653_v41  ;;  %v1651_v63 = vadd.f32 %v1624_v0, %v1522_v59  ;;  %v1525_v33 = vadd.f32 %v2157_v15, %v1393_v20 }
 0x16a   : > { %v1498_v23 = vpop.f32.mrf.mxu1 }
 0x16b   : > { %1702 = vst [vmem:[%s2921_s24 + $0x60] sm:$0xff] %v1651_v63  ;;  %v1654_v58 = vadd.f32 %v2175_v52, %v1525_v33  ;;  %v1523_v1 = vadd.f32 %v1498_v23, %v1391_v8 }
 0x16d   : > { %1705 = vst [vmem:[%s2921_s24 + $0x78] sm:$0xff] %v1654_v58  ;;  %v1652_v54 = vadd.f32 %v1627_v30, %v1523_v1 }
 0x16f   : > { %1703 = vst [vmem:[%s2921_s24 + $0x68] sm:$0xff] %v1652_v54 }
 0x170 PF: > { %s12_s13 = sadd.s32 1, %s2267_s13   ;;  %s3045_s9 = smov %s2259_s11 }
 0x171   : > { %p9_p7 = scmp.ge.s32.totalorder %s12_s13, 6   ;;  %s3046_s10 = smov %s2263_s12 }
 0x172   : > { %s3047_s11 = smov %s3050_s14  ;;  %s3048_s12 = smov %s3054_s15 }
 0x173   :  { %11 = sbr.rel (!%p9_p7) target bundleno = 3 (0x3), region = 78 }

</bundles_post_ra>
